<compile_context>
chip_gen: v7x
topology: tpu7x:2x2x1
jax: 0.10.0
libtpu: 0.0.40
codegen_flags: <defaults>
</compile_context>

<pallas_src>
import jax
import jax.numpy as jnp
from jax.experimental import pallas as pl
from jax.experimental.pallas import tpu as pltpu


def _mlp_kernel(x_ref, w1_ref, b1_ref, w2_ref, b2_ref, o_ref):
    # Hidden layer: (tB, F) @ (F, Hp) on the MXU, f32 accumulation.
    h = jnp.dot(x_ref[...], w1_ref[...], preferred_element_type=jnp.float32)
    h = jnp.maximum(h + b1_ref[...], 0.0)          # bias + ReLU in f32 (VPU)
    # Output layer: (tB, Hp) @ (Hp, Op); cast activation to bf16 for the MXU.
    y = jnp.dot(h.astype(w2_ref.dtype), w2_ref[...],
                preferred_element_type=jnp.float32)
    o_ref[...] = (y + b2_ref[...]).astype(o_ref.dtype)


def _round_up(n, m):
    return ((n + m - 1) // m) * m


def net_forward(x, w1, b1, w2, b2, *, tile_b=128):
    """x: (B, F) f32; w1: (F, H); b1: (H,); w2: (H, O); b2: (O,).
    Weights stored as (in, out) = transpose of PyTorch's (out, in) layout."""
    B, F = x.shape
    H = w1.shape[1]
    O = w2.shape[1]

    Hp = _round_up(H, 128)          # lane-dense hidden dim
    Op = _round_up(O, 128)          # lane-dense output dim
    Bp = _round_up(B, tile_b)       # batch padded to a whole number of tiles

    # Zero-padded, bf16 matmul operands (f32 biases).
    xb = jnp.zeros((Bp, F), jnp.bfloat16).at[:B].set(x.astype(jnp.bfloat16))
    w1b = jnp.zeros((F, Hp), jnp.bfloat16).at[:, :H].set(w1.astype(jnp.bfloat16))
    b1p = jnp.zeros((1, Hp), jnp.float32).at[:, :H].set(b1.reshape(1, -1))
    w2b = jnp.zeros((Hp, Op), jnp.bfloat16).at[:H, :O].set(w2.astype(jnp.bfloat16))
    b2p = jnp.zeros((1, Op), jnp.float32).at[:, :O].set(b2.reshape(1, -1))

    # VMEM budget: double-buffered x/out tiles + resident (double-buffered) weights.
    tile_bytes = 2 * (tile_b * F * 2 + tile_b * Op * 4          # x tile, out tile
                      + F * Hp * 2 + Hp * Op * 2                # w1, w2 (bf16)
                      + Hp * 4 + Op * 4)                        # b1, b2 (f32)
    vmem_limit = int(min(max(2 * tile_bytes, 4 << 20), 48 << 20))

    out = pl.pallas_call(
        _mlp_kernel,
        out_shape=jax.ShapeDtypeStruct((Bp, Op), jnp.float32),
        grid=(Bp // tile_b,),
        in_specs=[
            pl.BlockSpec((tile_b, F), lambda i: (i, 0)),   # batch-tiled x
            pl.BlockSpec((F, Hp), lambda i: (0, 0)),       # VMEM-resident weights
            pl.BlockSpec((1, Hp), lambda i: (0, 0)),
            pl.BlockSpec((Hp, Op), lambda i: (0, 0)),
            pl.BlockSpec((1, Op), lambda i: (0, 0)),
        ],
        out_specs=pl.BlockSpec((tile_b, Op), lambda i: (i, 0)),
        compiler_params=pltpu.CompilerParams(
            dimension_semantics=("parallel",),
            vmem_limit_bytes=vmem_limit,
        ),
    )(xb, w1b, b1p, w2b, b2p)

    return out[:B, :O]


def init_params(key, n_feature, n_hidden, n_output):
    """Deterministic init mimicking torch.nn.Linear's uniform(-1/sqrt(fan_in), ...)."""
    k1, k2, k3, k4 = jax.random.split(key, 4)
    bound1 = 1.0 / jnp.sqrt(jnp.float32(n_feature))
    bound2 = 1.0 / jnp.sqrt(jnp.float32(n_hidden))
    w1 = jax.random.uniform(k1, (n_feature, n_hidden), jnp.float32, -bound1, bound1)
    b1 = jax.random.uniform(k2, (n_hidden,), jnp.float32, -bound1, bound1)
    w2 = jax.random.uniform(k3, (n_hidden, n_output), jnp.float32, -bound2, bound2)
    b2 = jax.random.uniform(k4, (n_output,), jnp.float32, -bound2, bound2)
    return w1, b1, w2, b2


if __name__ == "__main__":
    key = jax.random.PRNGKey(0)
    kx0, kx1, kp = jax.random.split(key, 3)

    # Same setup as Classifier.py: two 100-point gaussian clusters at +2 / -2 in 2-D,
    # classified into 2 classes through a 32-unit hidden layer. Processing the whole
    # dataset in one pallas_call amortizes launch/DMA overhead.
    n_per_class, n_feature, n_hidden, n_output = 100, 2, 32, 2
    x0 = 2.0 + jax.random.normal(kx0, (n_per_class, n_feature), jnp.float32)
    x1 = -2.0 + jax.random.normal(kx1, (n_per_class, n_feature), jnp.float32)
    x = jnp.concatenate([x0, x1], axis=0)              # (200, 2)

    w1, b1, w2, b2 = init_params(kp, n_feature, n_hidden, n_output)

    out = net_forward(x, w1, b1, w2, b2)
    out = jax.block_until_ready(out)
    assert out.shape == (2 * n_per_class, n_output)

    # Reference with matching bf16-input / f32-accumulate math.
    xb, w1b, w2b = (x.astype(jnp.bfloat16), w1.astype(jnp.bfloat16),
                    w2.astype(jnp.bfloat16))
    h_ref = jnp.maximum(
        jnp.dot(xb, w1b, preferred_element_type=jnp.float32) + b1, 0.0)
    ref = jnp.dot(h_ref.astype(jnp.bfloat16), w2b,
                  preferred_element_type=jnp.float32) + b2
    assert jnp.allclose(out, ref, atol=1e-3, rtol=1e-3)

    # Loose sanity check against full-f32 math (bf16 inputs => ~1e-2 relative error).
    ref32 = jnp.maximum(x @ w1 + b1, 0.0) @ w2 + b2
    assert jnp.allclose(out, ref32, atol=5e-2, rtol=5e-2)

    print("KERNEL_OK")
</pallas_src>

<mosaic_0001>
module attributes {stable_mosaic.version = 11 : i64} {
  func.func @_mlp_kernel(%arg0: i32, %arg1: memref<128x2xbf16, #tpu.memory_space<vmem>>, %arg2: memref<2x128xbf16, #tpu.memory_space<vmem>>, %arg3: memref<1x128xf32, #tpu.memory_space<vmem>>, %arg4: memref<128x128xbf16, #tpu.memory_space<vmem>>, %arg5: memref<1x128xf32, #tpu.memory_space<vmem>>, %arg6: memref<128x128xf32, #tpu.memory_space<vmem>>) attributes {dimension_semantics = [#tpu.dimension_semantics<parallel>], iteration_bounds = array<i64: 2>, scalar_prefetch = 0 : i64, scratch_operands = 0 : i64, tpu.core_type = #tpu.core_type<tc>, window_params = [{transform_indices = @transform_0, window_bounds = array<i64: 128, 2>}, {pipeline_mode = #tpu.pipeline_mode<synchronous>, transform_indices = @transform_1, window_bounds = array<i64: 2, 128>}, {pipeline_mode = #tpu.pipeline_mode<synchronous>, transform_indices = @transform_2, window_bounds = array<i64: 1, 128>}, {pipeline_mode = #tpu.pipeline_mode<synchronous>, transform_indices = @transform_3, window_bounds = array<i64: 128, 128>}, {pipeline_mode = #tpu.pipeline_mode<synchronous>, transform_indices = @transform_4, window_bounds = array<i64: 1, 128>}, {transform_indices = @transform_5, window_bounds = array<i64: 128, 128>}]} {
    %c0 = arith.constant 0 : index
    %c0_0 = arith.constant 0 : index
    %0 = vector.load %arg1[%c0, %c0_0] : memref<128x2xbf16, #tpu.memory_space<vmem>>, vector<128x2xbf16>
    %c0_1 = arith.constant 0 : index
    %c0_2 = arith.constant 0 : index
    %1 = vector.load %arg2[%c0_1, %c0_2] : memref<2x128xbf16, #tpu.memory_space<vmem>>, vector<2x128xbf16>
    %cst = arith.constant dense<0.000000e+00> : vector<128x128xf32>
    %2 = tpu.matmul %0, %1, %cst {dimension_numbers = #tpu.dot_dimension_numbers<[1], [0], [0], [1], [0, 0, 1, 1], [], []>} : vector<128x2xbf16>, vector<2x128xbf16>, vector<128x128xf32> -> vector<128x128xf32>
    %c0_3 = arith.constant 0 : index
    %c0_4 = arith.constant 0 : index
    %3 = vector.load %arg3[%c0_3, %c0_4] : memref<1x128xf32, #tpu.memory_space<vmem>>, vector<1x128xf32>
    %4 = vector.broadcast %3 : vector<1x128xf32> to vector<128x128xf32>
    %5 = arith.addf %2, %4 : vector<128x128xf32>
    %cst_5 = arith.constant 0.000000e+00 : f32
    %6 = vector.broadcast %cst_5 : f32 to vector<128x128xf32>
    %7 = arith.maximumf %5, %6 : vector<128x128xf32>
    %8 = arith.truncf %7 : vector<128x128xf32> to vector<128x128xbf16>
    %c0_6 = arith.constant 0 : index
    %c0_7 = arith.constant 0 : index
    %9 = vector.load %arg4[%c0_6, %c0_7] : memref<128x128xbf16, #tpu.memory_space<vmem>>, vector<128x128xbf16>
    %cst_8 = arith.constant dense<0.000000e+00> : vector<128x128xf32>
    %10 = tpu.matmul %8, %9, %cst_8 {dimension_numbers = #tpu.dot_dimension_numbers<[1], [0], [0], [1], [0, 0, 1, 1], [], []>} : vector<128x128xbf16>, vector<128x128xbf16>, vector<128x128xf32> -> vector<128x128xf32>
    %c0_9 = arith.constant 0 : index
    %c0_10 = arith.constant 0 : index
    %11 = vector.load %arg5[%c0_9, %c0_10] : memref<1x128xf32, #tpu.memory_space<vmem>>, vector<1x128xf32>
    %12 = vector.broadcast %11 : vector<1x128xf32> to vector<128x128xf32>
    %13 = arith.addf %10, %12 : vector<128x128xf32>
    %c0_11 = arith.constant 0 : index
    %c0_12 = arith.constant 0 : index
    %14 = vector.load %arg6[%c0_11, %c0_12] : memref<128x128xf32, #tpu.memory_space<vmem>>, vector<128x128xf32>
    tpu.vector_store %arg6[%c0_11, %c0_12], %13 {strides = array<i32>} : memref<128x128xf32, #tpu.memory_space<vmem>>, vector<128x128xf32>,
    return
  }
  func.func @transform_0(%arg0: i32) -> (i32, i32) {
    %c0_i32 = arith.constant 0 : i32
    %c0_i32_0 = arith.constant 0 : i32
    return %arg0, %c0_i32 : i32, i32
  }
  func.func @transform_1(%arg0: i32) -> (i32, i32) {
    %c0_i32 = arith.constant 0 : i32
    %c0_i32_0 = arith.constant 0 : i32
    %c0_i32_1 = arith.constant 0 : i32
    return %c0_i32, %c0_i32_0 : i32, i32
  }
  func.func @transform_2(%arg0: i32) -> (i32, i32) {
    %c0_i32 = arith.constant 0 : i32
    %c0_i32_0 = arith.constant 0 : i32
    %c0_i32_1 = arith.constant 0 : i32
    return %c0_i32, %c0_i32_0 : i32, i32
  }
  func.func @transform_3(%arg0: i32) -> (i32, i32) {
    %c0_i32 = arith.constant 0 : i32
    %c0_i32_0 = arith.constant 0 : i32
    %c0_i32_1 = arith.constant 0 : i32
    return %c0_i32, %c0_i32_0 : i32, i32
  }
  func.func @transform_4(%arg0: i32) -> (i32, i32) {
    %c0_i32 = arith.constant 0 : i32
    %c0_i32_0 = arith.constant 0 : i32
    %c0_i32_1 = arith.constant 0 : i32
    return %c0_i32, %c0_i32_0 : i32, i32
  }
  func.func @transform_5(%arg0: i32) -> (i32, i32) {
    %c0_i32 = arith.constant 0 : i32
    %c0_i32_0 = arith.constant 0 : i32
    return %arg0, %c0_i32 : i32, i32
  }
}

</mosaic_0001>

<bundles_post_ra>
// kernel: tpu_custom_call.1
= control target key start
LH: loop header
LB: loop body
LE: loop exit
PB: predicated region body
PF: predicated region fallthrough
CT: control target
= control target key end

     0   :  { %10 = vsyncpa [#allocation3], 0  ;;  %s1162_s0 = inlined_call_operand.vmem [shape: bf16[256,2], index: 0, kind: input, shape index: {}]   ;;  %s1163_s1 = inlined_call_operand.vmem [shape: bf16[2,128], index: 1, kind: input, shape index: {}]   ;;  %s1164_s2 = inlined_call_operand.vmem [shape: f32[1,128], index: 2, kind: input, shape index: {}]   ;;  %s1165_s3 = inlined_call_operand.vmem [shape: bf16[128,128], index: 3, kind: input, shape index: {}]   ;;  %s1166_s4 = inlined_call_operand.vmem [shape: f32[1,128], index: 4, kind: input, shape index: {}]   ;;  %s1167_s5 = inlined_call_operand.hbm [shape: f32[256,128], index: 5, kind: output, shape index: {}]  }
   0x1   :  { %12 = vsyncpa [#allocation3 + $0x1], 0  ;;  %s986_s18 = smov 0   ;;  %s988_s19 = smov 0  }
   0x2   :  { %s990_s20 = smov 0   ;;  %s992_s21 = smov 0  }
   0x3 LB: > { %s1007_s22 = sadd.s32 4294967295, %s951_s21   ;;  %s701_s23 = sadd.s32 4294967294, %s951_s21   ;;  %s951_s21 = sphi %s992_s21, %s1173_s21   ;;  %s947_s20 = sphi %s990_s20, %s1172_s20   ;;  %s943_s19 = sphi %s988_s19, %s1171_s19   ;;  %s939_s18 = sphi %s986_s18, %s1170_s18  }
   0x4   : > { %s1011_s24 = sadd.s32 1, %s951_s21   ;;  %s135_s25 = sadd.s32 1, %s947_s20 }
   0x5   : > { %s132_s26 = ssub.s32 %s951_s21, %s1011_s24  ;;  %p145_p0 = scmp.ne.s32.totalorder %s947_s20, %s943_s19 }
   0x6   : > { %p133_p1 = scmp.eq.s32.totalorder %s132_s26, 0  ;;  %p146_p2 = scmp.eq.s32.totalorder %s1007_s22, 1 }
   0x7   : > { %p151_p3 = scmp.ne.s32.totalorder %s943_s19, %s939_s18  ;;  %p152_p4 = scmp.eq.s32.totalorder %s701_s23, 1 }
   0x8   : > { %s1022_s27 = scalar_select %p133_p1, %s947_s20, %s135_s25  }
   0x9   : > { %p1024_p5 = por %p146_p2, %p145_p0  ;;  %p1028_p6 = por %p152_p4, %p151_p3 }
   0xa   : > { %p704_p7 = scmp.ge.s32.totalorder %s951_s21, 1  ;;  %p191_p8 = scmp.lt.s32.totalorder %s951_s21, 3 }
   0xc   : > { %p192_p9 = pnand %p704_p7, %p191_p8 }
   0xd   : > { %v243_v0 = vld [vmem:[%s1163_s1] sm:$0x1] (!%p192_p9)  ;;  %vm316_vm0 = vcmask (!%p192_p9), 1040384   ;;  %s706_s7 = sshll.u32 (!%p192_p9), %s1007_s22, 4  ;;  %v882_v3 = vld [vmem:[%s1165_s3 + $0x8] sm:$0xff] (!%p192_p9)   ;;  %vm291_vm1 = vcmask (!%p192_p9), 15360  }
   0xe   : > { %195 = sbr.rel (%p192_p9) target bundleno = 504 (0x1f8), region = 40  ;;  %v881_v1 = vld [vmem:[%s1165_s3] sm:$0xff] (!%p192_p9)   ;;  %831 = vmatprep.subr.msk.bf16.mxu0 (!%p192_p9), %vm316_vm0, %v243_v0  ;;  %v318_v2 = vsel (!%p192_p9), %vm316_vm0, %v243_v0, 0  ;;  %p220_p10 = scmp.lt.s32.totalorder (!%p192_p9), %s706_s7, 31  ;;  %v883_v4 = vld [vmem:[%s1165_s3 + $0x10] sm:$0xff] (!%p192_p9)   ;;  %v884_v8 = vld [vmem:[%s1165_s3 + $0x18] sm:$0xff] (!%p192_p9)  }
   0xf   : > { %766 = vmatpush3.bf16.msra.mxu0 (!%p192_p9), %v318_v2  ;;  %815 = vmatprep.subr.bf16.mxu1 (!%p192_p9), %v881_v1  ;;  %v885_v10 = vld [vmem:[%s1165_s3 + $0x20] sm:$0xff] (!%p192_p9)   ;;  %v886_v12 = vld [vmem:[%s1165_s3 + $0x28] sm:$0xff] (!%p192_p9)   ;;  %v887_v16 = vld [vmem:[%s1165_s3 + $0x30] sm:$0xff] (!%p192_p9)   ;;  %s216_s14 = sand.u32 (!%p192_p9), 1, %s943_s19   ;;  %s739_s25 = sshll.u32 (!%p192_p9), %s1007_s22, 11 }
  0x10   : > { %783 = vmatprep.subr.bf16.mxu0 (!%p192_p9), %v881_v1  ;;  %823 = vmatpush3.bf16.msra.mxu1 (!%p192_p9), %v881_v1  ;;  %v888_v17 = vld [vmem:[%s1165_s3 + $0x38] sm:$0xff] (!%p192_p9)   ;;  %v708_v18 = vld [vmem:[%s1164_s2] ss:$0 sm:$0xff] (!%p192_p9)  ;;  %s1121_s22 = scalar_lea.sflag (!%p192_p9), [#allocation3], %s216_s14  ;;  %s953_s9 = smov (!%p192_p9), [#allocation2]  }
  0x11   : > { %816 = vmatprep.subr.bf16.mxu1 (!%p192_p9), %v882_v3  ;;  %s893_s10 = sshll.u32 (!%p192_p9), %s953_s9, 4  ;;  %s894_s10 = int_to_ptr.vmem [resolvable:$false] %s893_s10 }
  0x12   : > { %s895_s11 = scalar_lea.vmem (!%p192_p9), %s894_s10, 4096 }
  0x14   : > { %824 = vmatpush3.bf16.msra.mxu1 (!%p192_p9), %v882_v3 }
  0x15   : > { %s1175_s7 = smov (!%p220_p10, %s706_s7), 31  ;;  %817 = vmatprep.subr.bf16.mxu1 %v883_v4 }
  0x16   : > { %s707_s12 = sshll.u32 %s1175_s7, 2  ;;  %s1112_s7 = scalar_lea.hbm %s1167_s5, %s739_s25 }
  0x17   : > { %s1047_s15 = scalar_lea.vmem %s1162_s0, %s707_s12 }
  0x18   : > { %v873_v5 = vld [vmem:[%s1047_s15] sm:$0xff]   ;;  %v874_v6 = vld [vmem:[%s1047_s15 + $0x8] sm:$0xff]   ;;  %v875_v7 = vld [vmem:[%s1047_s15 + $0x10] sm:$0xff]   ;;  %825 = vmatpush3.bf16.msra.mxu1 %v883_v4 }
  0x19   : > { %767 = vmatprep.mubr.msk.bf16.mxu0 %vm291_vm1, %v873_v5  ;;  %v876_v9 = vld [vmem:[%s1047_s15 + $0x18] sm:$0xff]   ;;  %818 = vmatprep.subr.bf16.mxu1 %v884_v8  ;;  %v877_v11 = vld [vmem:[%s1047_s15 + $0x20] sm:$0xff]   ;;  %v878_v13 = vld [vmem:[%s1047_s15 + $0x28] sm:$0xff]  }
  0x1a   : > { %768 = vmatmul.mubr.msk.bf16.vlgmr.msra.gmra.mrb[0].mxu0 %vm291_vm1, %v874_v6  ;;  %v879_v14 = vld [vmem:[%s1047_s15 + $0x30] sm:$0xff]   ;;  %v880_v15 = vld [vmem:[%s1047_s15 + $0x38] sm:$0xff]   ;;  %s705_s15 = sshll.u32 %s216_s14, 7 }
  0x1b   : > { %771 = vmatprep.mubr.msk.bf16.mxu0 %vm291_vm1, %v875_v7  ;;  %784 = vmatpush3.bf16.msra.mxu0 %v881_v1  ;;  %s1092_s23 = scalar_lea.vmem [#allocation2], %s705_s15 }
  0x1c   : > { %785 = vmatprep.subr.bf16.mxu0 %v882_v3  ;;  %826 = vmatpush3.bf16.msra.mxu1 %v884_v8  ;;  %s639_s26 = sshll.u32 %s1092_s23, 4  ;;  %s1114_s26 = int_to_ptr.vmem [resolvable:$true] %s639_s26 }
  0x1d   : > { %819 = vmatprep.subr.bf16.mxu1 %v885_v10  ;;  %s889_s8 = scalar_lea.vmem %s1114_s26, 2048  ;;  %p896_p0 = scmp.lt.s32.totalorder %s1114_s26, %s894_s10 }
  0x1e   : > { %p890_p11 = scmp.ne.s32.totalorder %s1114_s26, %s889_s8  ;;  %p897_p1 = scmp.lt.s32.totalorder %s895_s11, %s889_s8 }
  0x1f   : > { %786 = vmatpush3.bf16.msra.mxu0 %v882_v3 }
  0x20   : > { %787 = vmatprep.subr.bf16.mxu0 %v883_v4  ;;  %827 = vmatpush3.bf16.msra.mxu1 %v885_v10  ;;  %p891_p12 = pnand %p890_p11, %p1024_p5  ;;  %p898_p2 = por %p897_p1, %p896_p0 }
  0x21   : > { %820 = vmatprep.subr.bf16.mxu1 %v886_v12 }
  0x22   : > { %772 = vmatmul.mubr.msk.bf16.gmra.mrb[4].mxu0 %vm291_vm1, %v876_v9  ;;  %p892_p13 = pneg %p891_p12 }
  0x23   : > { %775 = vmatprep.mubr.msk.bf16.mxu0 %vm291_vm1, %v877_v11  ;;  %788 = vmatpush3.bf16.msra.mxu0 %v883_v4  ;;  %v725_v11 = vld [vmem:[%s1166_s4] ss:$0 sm:$0xff] }
  0x24   : > { %789 = vmatprep.subr.bf16.mxu0 %v884_v8  ;;  %828 = vmatpush3.bf16.msra.mxu1 %v886_v12  ;;  %p899_p3 = pnand %p898_p2, %p892_p13 }
  0x25   : > { %821 = vmatprep.subr.bf16.mxu1 %v887_v16 }
  0x27   : > { %790 = vmatpush3.bf16.msra.mxu0 %v884_v8 }
  0x28   : > { %791 = vmatprep.subr.bf16.mxu0 %v885_v10  ;;  %829 = vmatpush3.bf16.msra.mxu1 %v887_v16 }
  0x29   : > { %822 = vmatprep.subr.bf16.mxu1 %v888_v17 }
  0x2a   : > { %776 = vmatmul.mubr.msk.bf16.gmra.mrb[8].mxu0 %vm291_vm1, %v878_v13 }
  0x2b   : > { %779 = vmatprep.mubr.msk.bf16.mxu0 %vm291_vm1, %v879_v14  ;;  %792 = vmatpush3.bf16.msra.mxu0 %v885_v10 }
  0x2c   : > { %793 = vmatprep.subr.bf16.mxu0 %v886_v12  ;;  %830 = vmatpush3.bf16.msra.mxu1 %v888_v17 }
  0x2f   : > { %794 = vmatpush3.bf16.msra.mxu0 %v886_v12 }
  0x30   : > { %795 = vmatprep.subr.bf16.mxu0 %v887_v16 }
  0x32   : > { %780 = vmatmul.mubr.msk.bf16.gmra.mrb[12].mxu0 %vm291_vm1, %v880_v15 }
  0x33   : > { %796 = vmatpush3.bf16.msra.mxu0 %v887_v16 }
  0x34   : > { %797 = vmatprep.subr.bf16.mxu0 %v888_v17 }
  0x37   : > { %798 = vmatpush3.bf16.msra.mxu0 %v888_v17 }
  0xed   : > { %v769_v19 = vpop.f32.mrb[0].mxu0 }
  0xee   : > { %v363_v20 = vadd.f32 %v769_v19, %v708_v18  ;;  %v354_v21 = vpop.f32.mrb[1].mxu0 }
  0xef   : > { %v355_v22 = vadd.f32 %v708_v18, %v354_v21  ;;  %v770_v23 = vpop.f32.mrb[2].mxu0 }
  0xf0   : > { %v366_v24 = vadd.f32 %v770_v23, %v708_v18  ;;  %v357_v25 = vpop.f32.mrb[3].mxu0  ;;  %v419_v27 = vmax.f32 %v363_v20, 0.0 }
  0xf1   : > { %v358_v26 = vadd.f32 %v708_v18, %v357_v25  ;;  %v417_v29 = vmax.f32 %v355_v22, 0.0 }
  0xf2   : > { %v420_v28 = vmax.f32 %v366_v24, 0.0 }
  0xf3   : > { %v418_v30 = vmax.f32 %v358_v26, 0.0 }
  0xf4   : > { %v434_v31 = vpack.c.bf16 %v420_v28, %v419_v27 }
  0xf5   : > { %v433_v32 = vpack.c.bf16 %v418_v30, %v417_v29  ;;  %v773_v33 = vpop.f32.mrb[4].mxu0 }
  0xf6   : > { %v379_v34 = vadd.f32 %v773_v33, %v708_v18  ;;  %v370_v35 = vpop.f32.mrb[5].mxu0 }
  0xf7   : > { %v371_v36 = vadd.f32 %v708_v18, %v370_v35  ;;  %v774_v37 = vpop.f32.mrb[6].mxu0  ;;  %799 = vmatprep.mubr.bf16.mxu0 %v433_v32 }
  0xf8   : > { %v382_v38 = vadd.f32 %v774_v37, %v708_v18  ;;  %v373_v39 = vpop.f32.mrb[7].mxu0  ;;  %800 = vmatmul.mubr.bf16.vlgmr.msra.gmra.mrb[16].mxu0 %v434_v31  ;;  %v423_v41 = vmax.f32 %v379_v34, 0.0 }
  0xf9   : > { %v374_v40 = vadd.f32 %v708_v18, %v373_v39  ;;  %v421_v43 = vmax.f32 %v371_v36, 0.0 }
  0xfa   : > { %v424_v42 = vmax.f32 %v382_v38, 0.0 }
  0xfb   : > { %v422_v44 = vmax.f32 %v374_v40, 0.0 }
  0xfc   : > { %v436_v45 = vpack.c.bf16 %v424_v42, %v423_v41 }
  0xfd   : > { %v777_v46 = vpop.f32.mrb[8].mxu0  ;;  %v435_v47 = vpack.c.bf16 %v422_v44, %v421_v43 }
  0xfe   : > { %v395_v48 = vadd.f32 %v777_v46, %v708_v18  ;;  %v386_v49 = vpop.f32.mrb[9].mxu0 }
  0xff   : > { %v387_v50 = vadd.f32 %v708_v18, %v386_v49  ;;  %v778_v51 = vpop.f32.mrb[10].mxu0  ;;  %803 = vmatprep.mubr.bf16.mxu1 %v435_v47 }
 0x100   : > { %v398_v52 = vadd.f32 %v778_v51, %v708_v18  ;;  %v389_v53 = vpop.f32.mrb[11].mxu0  ;;  %804 = vmatmul.mubr.bf16.vlgmr.msra.gmra.mrb[0].mxu1 %v436_v45  ;;  %v427_v55 = vmax.f32 %v395_v48, 0.0 }
 0x101   : > { %v390_v54 = vadd.f32 %v708_v18, %v389_v53  ;;  %v425_v57 = vmax.f32 %v387_v50, 0.0 }
 0x102   : > { %v428_v56 = vmax.f32 %v398_v52, 0.0 }
 0x103   : > { %v426_v58 = vmax.f32 %v390_v54, 0.0 }
 0x104   : > { %v438_v59 = vpack.c.bf16 %v428_v56, %v427_v55 }
 0x105   : > { %v437_v60 = vpack.c.bf16 %v426_v58, %v425_v57  ;;  %v781_v61 = vpop.f32.mrb[12].mxu0 }
 0x106   : > { %v411_v62 = vadd.f32 %v781_v61, %v708_v18  ;;  %v402_v63 = vpop.f32.mrb[13].mxu0 }
 0x107   : > { %v403_v0 = vadd.f32 %v708_v18, %v402_v63  ;;  %v782_v1 = vpop.f32.mrb[14].mxu0  ;;  %807 = vmatprep.mubr.bf16.mxu1 %v437_v60 }
 0x108   : > { %v414_v2 = vadd.f32 %v782_v1, %v708_v18  ;;  %v405_v3 = vpop.f32.mrb[15].mxu0  ;;  %808 = vmatmul.mubr.bf16.gmra.mrb[4].mxu1 %v438_v59  ;;  %v431_v5 = vmax.f32 %v411_v62, 0.0 }
 0x109   : > { %v406_v4 = vadd.f32 %v708_v18, %v405_v3  ;;  %v429_v7 = vmax.f32 %v403_v0, 0.0 }
 0x10a   : > { %v432_v6 = vmax.f32 %v414_v2, 0.0 }
 0x10b   : > { %v430_v8 = vmax.f32 %v406_v4, 0.0 }
 0x10c   : > { %v440_v9 = vpack.c.bf16 %v432_v6, %v431_v5 }
 0x10d   : > { %v439_v10 = vpack.c.bf16 %v430_v8, %v429_v7 }
 0x10f   : > { %811 = vmatprep.mubr.bf16.mxu1 %v439_v10 }
 0x110   : > { %812 = vmatmul.mubr.bf16.gmra.mrb[8].mxu1 %v440_v9 }
 0x1cb   : > { %v801_v12 = vpop.f32.mrb[16].mxu0 }
 0x1cc   : > { %v555_v13 = vadd.f32 %v801_v12, %v725_v11  ;;  %v546_v14 = vpop.f32.mrb[17].mxu0 }
 0x1cd   : > { %v547_v15 = vadd.f32 %v725_v11, %v546_v14  ;;  %v802_v16 = vpop.f32.mrb[18].mxu0 }
 0x1ce   : > { %611 = vst [vmem:[%s1092_s23 + $0x10] sm:$0xff] %v555_v13  ;;  %v558_v17 = vadd.f32 %v802_v16, %v725_v11  ;;  %v549_v18 = vpop.f32.mrb[19].mxu0 }
 0x1cf   : > { %609 = vst [vmem:[%s1092_s23] sm:$0xff] %v547_v15  ;;  %v550_v19 = vadd.f32 %v725_v11, %v549_v18 }
 0x1d0   : > { %612 = vst [vmem:[%s1092_s23 + $0x18] sm:$0xff] %v558_v17 }
 0x1d1   : > { %610 = vst [vmem:[%s1092_s23 + $0x8] sm:$0xff] %v550_v19 }
 0x1d3   : > { %v805_v20 = vpop.f32.mrb[0].mxu1 }
 0x1d4   : > { %v571_v21 = vadd.f32 %v805_v20, %v725_v11  ;;  %v562_v22 = vpop.f32.mrb[1].mxu1 }
 0x1d5   : > { %v563_v23 = vadd.f32 %v725_v11, %v562_v22  ;;  %v806_v24 = vpop.f32.mrb[2].mxu1 }
 0x1d6   : > { %615 = vst [vmem:[%s1092_s23 + $0x30] sm:$0xff] %v571_v21  ;;  %v574_v25 = vadd.f32 %v806_v24, %v725_v11  ;;  %v565_v26 = vpop.f32.mrb[3].mxu1 }
 0x1d7   : > { %613 = vst [vmem:[%s1092_s23 + $0x20] sm:$0xff] %v563_v23  ;;  %v566_v27 = vadd.f32 %v725_v11, %v565_v26 }
 0x1d8   : > { %616 = vst [vmem:[%s1092_s23 + $0x38] sm:$0xff] %v574_v25 }
 0x1d9   : > { %614 = vst [vmem:[%s1092_s23 + $0x28] sm:$0xff] %v566_v27 }
 0x1db   : > { %v809_v28 = vpop.f32.mrb[4].mxu1 }
 0x1dc   : > { %v587_v29 = vadd.f32 %v809_v28, %v725_v11  ;;  %v578_v30 = vpop.f32.mrb[5].mxu1 }
 0x1dd   : > { %v579_v31 = vadd.f32 %v725_v11, %v578_v30  ;;  %v810_v32 = vpop.f32.mrb[6].mxu1 }
 0x1de   : > { %619 = vst [vmem:[%s1092_s23 + $0x50] sm:$0xff] %v587_v29  ;;  %v590_v33 = vadd.f32 %v810_v32, %v725_v11  ;;  %v581_v34 = vpop.f32.mrb[7].mxu1 }
 0x1df   : > { %617 = vst [vmem:[%s1092_s23 + $0x40] sm:$0xff] %v579_v31  ;;  %v582_v35 = vadd.f32 %v725_v11, %v581_v34 }
 0x1e0   : > { %620 = vst [vmem:[%s1092_s23 + $0x58] sm:$0xff] %v590_v33 }
 0x1e1   : > { %618 = vst [vmem:[%s1092_s23 + $0x48] sm:$0xff] %v582_v35 }
 0x1e3   : > { %v813_v36 = vpop.f32.mrb[8].mxu1 }
 0x1e4   : > { %v603_v37 = vadd.f32 %v813_v36, %v725_v11  ;;  %v594_v38 = vpop.f32.mrb[9].mxu1 }
 0x1e5   : > { %v595_v39 = vadd.f32 %v725_v11, %v594_v38  ;;  %v814_v40 = vpop.f32.mrb[10].mxu1 }
 0x1e6   : > { %623 = vst [vmem:[%s1092_s23 + $0x70] sm:$0xff] %v603_v37  ;;  %v606_v41 = vadd.f32 %v814_v40, %v725_v11  ;;  %v597_v42 = vpop.f32.mrb[11].mxu1 }
 0x1e7   : > { %621 = vst [vmem:[%s1092_s23 + $0x60] sm:$0xff] %v595_v39  ;;  %v598_v43 = vadd.f32 %v725_v11, %v597_v42 }
 0x1e8   : > { %624 = vst [vmem:[%s1092_s23 + $0x78] sm:$0xff] %v606_v41 }
 0x1e9   : > { %622 = vst [vmem:[%s1092_s23 + $0x68] sm:$0xff] %v598_v43 }
 0x1ea   : > { %902 = shalt.err (!%p899_p3)
}
 0x1eb   : > { %s903_s12 = scalar_lea.hbm %s1112_s7, 2048  ;;  %s907_s15 = scalar_lea.hbm %s1167_s5, 4096 }
 0x1ec   : > { %p904_p4 = scmp.ne.s32.totalorder %s1112_s7, %s903_s12  ;;  %p908_p9 = scmp.lt.u32.totalorder %s1112_s7, %s1167_s5 }
 0x1ed   : > { %p909_p10 = scmp.lt.u32.totalorder %s907_s15, %s903_s12  ;;  %p911_p12 = scmp.lt.u32.totalorder %s903_s12, %s1112_s7 }
 0x1ee   : > { %p905_p7 = pnand %p904_p4, %p1024_p5 }
 0x1ef   : > { %p910_p11 = por %p909_p10, %p908_p9 }
 0x1f0   : > { %p906_p8 = pneg %p905_p7 }
 0x1f1   : > { %p912_p13 = por %p911_p12, %p910_p11 }
 0x1f3   : > { %p913_p0 = pnand %p912_p13, %p906_p8 }
 0x1f5   : > { %916 = shalt.err (!%p913_p0)
}
 0x1f6   : > { %s954_s23 = smov 128   ;;  %s955_s25 = smov 8  }
 0x1f7   : > { %832 = dma.vmem_to_hbm [thread:$0]  (%p1024_p5), %s1114_s26, 2048, %s1112_s7, %s1121_s22, %s954_s23, %s954_s23, %s955_s25  }
 0x1f8 PF: > { %p838_p1 = scmp.ge.s32.totalorder %s951_s21, 2  ;;  %s654_s30 = sand.u32 1, %s939_s18  }
 0x1f9   : > { %s655_s6 = scalar_lea.sflag [#allocation3], %s654_s30 }
 0x1fa   : > { %p835_p2 = pnand %p838_p1, %p1028_p6 }
 0x1fc   : > { %934 = dma.done.wait (!%p835_p2), %s655_s6, 2048  }
 0x1fd   : > { %936 = vsyncadd (!%p835_p2), %s655_s6, 4294965248  ;;  %p15_p3 = scmp.ge.s32.totalorder %s1011_s24, 4   ;;  %s1170_s18 = smov %s943_s19 }
 0x1fe   : > { %s1171_s19 = smov %s947_s20  ;;  %s1172_s20 = smov %s1022_s27 }
 0x1ff   : > { %s1173_s21 = smov %s1011_s24  ;;  %17 = sbr.rel (!%p15_p3) target bundleno = 3 (0x3), region = 75 }
 0x206   :  { %660 = vsyncpa [#allocation3], 1 }
 0x207   :  { %662 = vsyncpa [#allocation3 + $0x1], 1 }

</bundles_post_ra>
